<compile_context>
chip_gen: v6e
topology: v6e:2x2x1
jax: 0.10.0
libtpu: 0.0.40
codegen_flags: <defaults>
</compile_context>

<pallas_src>
import math
from functools import partial

import jax
import jax.numpy as jnp
from jax import lax
from jax.experimental import pallas as pl
from jax.experimental.pallas import tpu as pltpu


def _round_up(x, m):
    return ((x + m - 1) // m) * m


def _pick_divisor(total, cap, quantum):
    """Largest t <= cap dividing `total` with t % quantum == 0 (or t == total)."""
    cap = max(1, min(cap, total))
    for t in range(cap, 0, -1):
        if total % t == 0 and (t % quantum == 0 or t == total):
            return t
    return total


# --------------------------- Pass 1: conv (matmul) + BN stats ---------------------------

def _conv_stats_kernel(w_ref, p_ref, z_ref, sum_ref, ssq_ref):
    # w_ref  : (TCO, CKKp)  bf16 im2col-flattened conv weights (Cout tile)
    # p_ref  : (CKKp, TS)   bf16 im2col patches (one sample, one spatial tile)
    # z_ref  : (TCO, TS)    f32 conv output tile (streamed to HBM)
    # sum_ref: (TCO, 1)     f32 per-channel running sum       (resident across n, s)
    # ssq_ref: (TCO, 1)     f32 per-channel running sum(z^2)  (resident across n, s)
    n = pl.program_id(1)
    s = pl.program_id(2)

    @pl.when((n == 0) & (s == 0))
    def _():
        sum_ref[...] = jnp.zeros_like(sum_ref)
        ssq_ref[...] = jnp.zeros_like(ssq_ref)

    z = jnp.dot(w_ref[...], p_ref[...], preferred_element_type=jnp.float32)
    z_ref[...] = z
    sum_ref[...] += jnp.sum(z, axis=1, keepdims=True)
    ssq_ref[...] += jnp.sum(z * z, axis=1, keepdims=True)


# --------------------------- Pass 1 (no BN): conv + ReLU fused ---------------------------

def _conv_relu_kernel(w_ref, p_ref, o_ref, *, use_relu):
    z = jnp.dot(w_ref[...], p_ref[...], preferred_element_type=jnp.float32)
    if use_relu:
        z = jnp.maximum(z, 0.0)
    o_ref[...] = z.astype(o_ref.dtype)


# --------------------------- Pass 2: folded BN affine + ReLU ---------------------------

def _bn_relu_kernel(z_ref, sum_ref, ssq_ref, g_ref, b_ref, o_ref, *, inv_count, use_relu):
    # Per-channel affine recomputed per tile (O(TCO) work); one FMA + max per element.
    # TODO(synk): single-pass E[z^2]-E[z]^2 can lose precision for |mean| >> std; a two-pass
    # centered variance would be safer if BN inputs can carry large offsets.
    z = z_ref[...]
    mean = sum_ref[...] * inv_count
    var = jnp.maximum(ssq_ref[...] * inv_count - mean * mean, 0.0)
    a = g_ref[...] * lax.rsqrt(var + jnp.float32(1e-5))
    b = b_ref[...] - mean * a
    y = z * a + b
    if use_relu:
        y = jnp.maximum(y, 0.0)
    o_ref[...] = y.astype(o_ref.dtype)


def conv_br(x, conv_w, bn_gamma, bn_beta, *, stride=1, padding=1, bn=True, relu=True):
    """x: (N, Cin, H, W) NCHW -> (N, Cout, OH, OW). Matches ConvBR.forward (training-mode BN)."""
    N, C, H, W = x.shape
    Cout, _, KH, KW = conv_w.shape
    OH = (H + 2 * padding - KH) // stride + 1
    OW = (W + 2 * padding - KW) // stride + 1
    CKK = C * KH * KW
    OHW = OH * OW

    # ---- tile selection ----
    co_tile = _pick_divisor(Cout, 256, 8)            # MXU-rows-sized Cout tile
    if Cout // co_tile < 2 and Cout >= 16:           # keep >=2 parallel tiles (v7x megacore)
        co_tile = _pick_divisor(Cout, Cout // 2, 8)
    ohw_tile = min(512, _round_up(OHW, 128))         # lane-dense spatial tile
    OHW_pad = _round_up(OHW, ohw_tile)
    CKK_pad = _round_up(CKK, 16)                     # bf16 sublane-friendly K dim

    # ---- im2col in the wrapper (layout plumbing only; all compute stays in kernels) ----
    xf = x.astype(jnp.float32)
    xp = jnp.pad(xf, ((0, 0), (0, 0), (padding, padding), (padding, padding)))
    cols = []
    for kh in range(KH):
        for kw in range(KW):
            cols.append(xp[:, :, kh:kh + stride * OH:stride, kw:kw + stride * OW:stride])
    pat = jnp.stack(cols, axis=2).reshape(N, CKK, OHW)       # (N, C*KH*KW, OH*OW)
    pat = jnp.pad(pat, ((0, 0), (0, CKK_pad - CKK), (0, OHW_pad - OHW)))
    pat = pat.astype(jnp.bfloat16)                           # bf16 MXU inputs, f32 accumulation
    w2d = jnp.pad(conv_w.reshape(Cout, CKK),
                  ((0, 0), (0, CKK_pad - CKK))).astype(jnp.bfloat16)

    grid = (Cout // co_tile, N, OHW_pad // ohw_tile)

    # Explicit VMEM budget: weights + patches + z tile (double-buffered) + headroom.
    vmem_est = (2 * co_tile * CKK_pad * 2 + 2 * CKK_pad * ohw_tile * 2
                + 4 * co_tile * ohw_tile * 4 + 4 * co_tile * 128 * 4)
    vmem_limit = int(min(56 * 2**20, max(16 * 2**20, 4 * vmem_est)))

    w_spec = pl.BlockSpec((co_tile, CKK_pad), lambda i, n, s: (i, 0))
    p_spec = pl.BlockSpec((None, CKK_pad, ohw_tile), lambda i, n, s: (n, 0, s))
    z_spec = pl.BlockSpec((None, co_tile, ohw_tile), lambda i, n, s: (n, i, s))
    ch_spec = pl.BlockSpec((co_tile, 1), lambda i, n, s: (i, 0))

    if not bn:
        out_flat = pl.pallas_call(
            partial(_conv_relu_kernel, use_relu=relu),
            out_shape=jax.ShapeDtypeStruct((N, Cout, OHW_pad), jnp.float32),
            grid_spec=pltpu.PrefetchScalarGridSpec(
                num_scalar_prefetch=0, grid=grid,
                in_specs=[w_spec, p_spec], out_specs=z_spec),
            compiler_params=pltpu.CompilerParams(
                dimension_semantics=("parallel", "parallel", "arbitrary"),
                vmem_limit_bytes=vmem_limit),
        )(w2d, pat)
    else:
        # ---- pass 1: conv matmul + per-channel sum / sum-of-squares ----
        z_flat, ssum, ssq = pl.pallas_call(
            _conv_stats_kernel,
            out_shape=(
                jax.ShapeDtypeStruct((N, Cout, OHW_pad), jnp.float32),
                jax.ShapeDtypeStruct((Cout, 1), jnp.float32),
                jax.ShapeDtypeStruct((Cout, 1), jnp.float32),
            ),
            grid_spec=pltpu.PrefetchScalarGridSpec(
                num_scalar_prefetch=0, grid=grid,
                in_specs=[w_spec, p_spec],
                out_specs=(z_spec, ch_spec, ch_spec)),
            compiler_params=pltpu.CompilerParams(
                dimension_semantics=("parallel", "arbitrary", "arbitrary"),
                vmem_limit_bytes=vmem_limit),
        )(w2d, pat)

        # ---- pass 2: folded BN affine (a*z + b) + ReLU ----
        count = float(N * OH * OW)   # real element count; zero-padded columns contribute 0
        out_flat = pl.pallas_call(
            partial(_bn_relu_kernel, inv_count=1.0 / count, use_relu=relu),
            out_shape=jax.ShapeDtypeStruct((N, Cout, OHW_pad), jnp.float32),
            grid_spec=pltpu.PrefetchScalarGridSpec(
                num_scalar_prefetch=0, grid=grid,
                in_specs=[z_spec, ch_spec, ch_spec, ch_spec, ch_spec],
                out_specs=z_spec),
            compiler_params=pltpu.CompilerParams(
                dimension_semantics=("parallel", "parallel", "arbitrary"),
                vmem_limit_bytes=vmem_limit),
        )(z_flat, ssum, ssq,
          bn_gamma.reshape(Cout, 1).astype(jnp.float32),
          bn_beta.reshape(Cout, 1).astype(jnp.float32))

    # (N, Cout, OHW_pad) -> (N, Cout, OH, OW): slice + reshape only, no HBM transpose.
    return out_flat[:, :, :OHW].reshape(N, Cout, OH, OW)


def _reference(x, conv_w, bn_gamma, bn_beta, *, stride, padding, bn=True, relu=True):
    """Plain-JAX reference with matching (bf16-input, f32-accumulate) matmul precision."""
    z = lax.conv_general_dilated(
        x.astype(jnp.bfloat16), conv_w.astype(jnp.bfloat16),
        window_strides=(stride, stride),
        padding=((padding, padding), (padding, padding)),
        dimension_numbers=('NCHW', 'OIHW', 'NCHW'),
        preferred_element_type=jnp.float32)
    if bn:
        mean = jnp.mean(z, axis=(0, 2, 3), keepdims=True)
        var = jnp.mean((z - mean) ** 2, axis=(0, 2, 3), keepdims=True)
        z = (z - mean) * lax.rsqrt(var + 1e-5)
        z = z * bn_gamma[None, :, None, None] + bn_beta[None, :, None, None]
    if relu:
        z = jnp.maximum(z, 0.0)
    return z


if __name__ == "__main__":
    key = jax.random.PRNGKey(0)
    k_x, k_w = jax.random.split(key, 2)

    N, Cin, Cout, H, W = 2, 4, 8, 16, 16
    KS, STRIDE, PAD = 3, 1, 1

    x = jax.random.normal(k_x, (N, Cin, H, W), dtype=jnp.float32)

    # Conv2d(Cin, Cout, 3, bias=False): kaiming_normal_(mode='fan_out', nonlinearity='relu')
    #   fan_out = Cout * KS * KS, std = sqrt(2 / fan_out)
    std = math.sqrt(2.0 / (Cout * KS * KS))
    conv_w = jax.random.normal(k_w, (Cout, Cin, KS, KS), dtype=jnp.float32) * std
    # BatchNorm2d: weight=1, bias=0
    bn_gamma = jnp.ones((Cout,), jnp.float32)
    bn_beta = jnp.zeros((Cout,), jnp.float32)

    out = conv_br(x, conv_w, bn_gamma, bn_beta, stride=STRIDE, padding=PAD)
    out = jax.block_until_ready(out)

    ref = jax.block_until_ready(
        _reference(x, conv_w, bn_gamma, bn_beta, stride=STRIDE, padding=PAD))

    assert out.shape == (N, Cout, H, W)
    assert jnp.allclose(out, ref, rtol=2e-3, atol=2e-3), "mismatch vs JAX reference"

    print("KERNEL_OK")
</pallas_src>

<mosaic_0001>
module attributes {stable_mosaic.version = 11 : i64} {
  func.func @_conv_stats_kernel(%arg0: i32, %arg1: i32, %arg2: i32, %arg3: memref<8x48xbf16, #tpu.memory_space<vmem>>, %arg4: memref<1x48x256xbf16, #tpu.memory_space<vmem>>, %arg5: memref<1x8x256xf32, #tpu.memory_space<vmem>>, %arg6: memref<8x1xf32, #tpu.memory_space<vmem>>, %arg7: memref<8x1xf32, #tpu.memory_space<vmem>>) attributes {dimension_semantics = [#tpu.dimension_semantics<parallel>, #tpu.dimension_semantics<arbitrary>, #tpu.dimension_semantics<arbitrary>], iteration_bounds = array<i64: 1, 2, 1>, scalar_prefetch = 0 : i64, scratch_operands = 0 : i64, tpu.core_type = #tpu.core_type<tc>, window_params = [{transform_indices = @transform_0, window_bounds = array<i64: 8, 48>}, {transform_indices = @transform_1, window_bounds = array<i64: 1, 48, 256>}, {transform_indices = @transform_2, window_bounds = array<i64: 1, 8, 256>}, {transform_indices = @transform_3, window_bounds = array<i64: 8, 1>}, {transform_indices = @transform_4, window_bounds = array<i64: 8, 1>}]} {
    %c0_i32 = arith.constant 0 : i32
    %0 = arith.cmpi eq, %arg1, %c0_i32 : i32
    %c0_i32_0 = arith.constant 0 : i32
    %1 = arith.cmpi eq, %arg2, %c0_i32_0 : i32
    %2 = arith.andi %0, %1 : i1
    %3 = arith.extui %2 : i1 to i32
    %c0_i32_1 = arith.constant 0 : i32
    %4 = arith.cmpi ne, %3, %c0_i32_1 : i32
    scf.if %4 {
      %cst_19 = arith.constant 0.000000e+00 : f32
      %23 = vector.broadcast %cst_19 : f32 to vector<8x1xf32>
      %c0_20 = arith.constant 0 : index
      %c0_21 = arith.constant 0 : index
      %24 = vector.load %arg6[%c0_20, %c0_21] : memref<8x1xf32, #tpu.memory_space<vmem>>, vector<8x1xf32>
      tpu.vector_store %arg6[%c0_20, %c0_21], %23 {strides = array<i32>} : memref<8x1xf32, #tpu.memory_space<vmem>>, vector<8x1xf32>,
      %cst_22 = arith.constant 0.000000e+00 : f32
      %25 = vector.broadcast %cst_22 : f32 to vector<8x1xf32>
      %c0_23 = arith.constant 0 : index
      %c0_24 = arith.constant 0 : index
      %26 = vector.load %arg7[%c0_23, %c0_24] : memref<8x1xf32, #tpu.memory_space<vmem>>, vector<8x1xf32>
      tpu.vector_store %arg7[%c0_23, %c0_24], %25 {strides = array<i32>} : memref<8x1xf32, #tpu.memory_space<vmem>>, vector<8x1xf32>,
    } else {
    }
    %c0 = arith.constant 0 : index
    %c0_2 = arith.constant 0 : index
    %5 = vector.load %arg3[%c0, %c0_2] : memref<8x48xbf16, #tpu.memory_space<vmem>>, vector<8x48xbf16>
    %c0_3 = arith.constant 0 : index
    %c0_4 = arith.constant 0 : index
    %c0_5 = arith.constant 0 : index
    %6 = vector.load %arg4[%c0_3, %c0_4, %c0_5] : memref<1x48x256xbf16, #tpu.memory_space<vmem>>, vector<1x48x256xbf16>
    %7 = vector.shape_cast %6 : vector<1x48x256xbf16> to vector<48x256xbf16>
    %cst = arith.constant dense<0.000000e+00> : vector<8x256xf32>
    %8 = tpu.matmul %5, %7, %cst {dimension_numbers = #tpu.dot_dimension_numbers<[1], [0], [0], [1], [0, 0, 1, 1], [], []>} : vector<8x48xbf16>, vector<48x256xbf16>, vector<8x256xf32> -> vector<8x256xf32>
    %c0_6 = arith.constant 0 : index
    %c0_7 = arith.constant 0 : index
    %c0_8 = arith.constant 0 : index
    %9 = vector.load %arg5[%c0_6, %c0_7, %c0_8] : memref<1x8x256xf32, #tpu.memory_space<vmem>>, vector<1x8x256xf32>
    %10 = vector.shape_cast %9 : vector<1x8x256xf32> to vector<8x256xf32>
    %11 = vector.shape_cast %8 : vector<8x256xf32> to vector<1x8x256xf32>
    tpu.vector_store %arg5[%c0_6, %c0_7, %c0_8], %11 {strides = array<i32>} : memref<1x8x256xf32, #tpu.memory_space<vmem>>, vector<1x8x256xf32>,
    %c0_9 = arith.constant 0 : index
    %c0_10 = arith.constant 0 : index
    %12 = vector.load %arg6[%c0_9, %c0_10] : memref<8x1xf32, #tpu.memory_space<vmem>>, vector<8x1xf32>
    %cst_11 = arith.constant dense<0.000000e+00> : vector<8xf32>
    %13 = vector.multi_reduction <add>, %8, %cst_11 [1] : vector<8x256xf32> to vector<8xf32>
    %14 = vector.shape_cast %13 : vector<8xf32> to vector<8x1xf32>
    %15 = arith.addf %12, %14 : vector<8x1xf32>
    %c0_12 = arith.constant 0 : index
    %c0_13 = arith.constant 0 : index
    %16 = vector.load %arg6[%c0_12, %c0_13] : memref<8x1xf32, #tpu.memory_space<vmem>>, vector<8x1xf32>
    tpu.vector_store %arg6[%c0_12, %c0_13], %15 {strides = array<i32>} : memref<8x1xf32, #tpu.memory_space<vmem>>, vector<8x1xf32>,
    %c0_14 = arith.constant 0 : index
    %c0_15 = arith.constant 0 : index
    %17 = vector.load %arg7[%c0_14, %c0_15] : memref<8x1xf32, #tpu.memory_space<vmem>>, vector<8x1xf32>
    %18 = arith.mulf %8, %8 : vector<8x256xf32>
    %cst_16 = arith.constant dense<0.000000e+00> : vector<8xf32>
    %19 = vector.multi_reduction <add>, %18, %cst_16 [1] : vector<8x256xf32> to vector<8xf32>
    %20 = vector.shape_cast %19 : vector<8xf32> to vector<8x1xf32>
    %21 = arith.addf %17, %20 : vector<8x1xf32>
    %c0_17 = arith.constant 0 : index
    %c0_18 = arith.constant 0 : index
    %22 = vector.load %arg7[%c0_17, %c0_18] : memref<8x1xf32, #tpu.memory_space<vmem>>, vector<8x1xf32>
    tpu.vector_store %arg7[%c0_17, %c0_18], %21 {strides = array<i32>} : memref<8x1xf32, #tpu.memory_space<vmem>>, vector<8x1xf32>,
    return
  }
  func.func @transform_0(%arg0: i32, %arg1: i32, %arg2: i32) -> (i32, i32) {
    %c0_i32 = arith.constant 0 : i32
    %c0_i32_0 = arith.constant 0 : i32
    return %arg0, %c0_i32 : i32, i32
  }
  func.func @transform_1(%arg0: i32, %arg1: i32, %arg2: i32) -> (i32, i32, i32) {
    %c0_i32 = arith.constant 0 : i32
    %c0_i32_0 = arith.constant 0 : i32
    return %arg1, %c0_i32, %arg2 : i32, i32, i32
  }
  func.func @transform_2(%arg0: i32, %arg1: i32, %arg2: i32) -> (i32, i32, i32) {
    %c0_i32 = arith.constant 0 : i32
    return %arg1, %arg0, %arg2 : i32, i32, i32
  }
  func.func @transform_3(%arg0: i32, %arg1: i32, %arg2: i32) -> (i32, i32) {
    %c0_i32 = arith.constant 0 : i32
    %c0_i32_0 = arith.constant 0 : i32
    return %arg0, %c0_i32 : i32, i32
  }
  func.func @transform_4(%arg0: i32, %arg1: i32, %arg2: i32) -> (i32, i32) {
    %c0_i32 = arith.constant 0 : i32
    %c0_i32_0 = arith.constant 0 : i32
    return %arg0, %c0_i32 : i32, i32
  }
}

</mosaic_0001>

<bundles_post_ra>
// kernel: tpu_custom_call.1
= control target key start
LH: loop header
LB: loop body
LE: loop exit
PB: predicated region body
PF: predicated region fallthrough
CT: control target
= control target key end

     0   :  { %s1048_s0 = inlined_call_operand.hbm [shape: bf16[8,48], index: 0, kind: input, shape index: {}]   ;;  %s1049_s1 = inlined_call_operand.hbm [shape: bf16[2,48,256], index: 1, kind: input, shape index: {}]   ;;  %s1050_s2 = inlined_call_operand.hbm [shape: f32[2,8,256], index: 2, kind: output, shape index: {0}]   ;;  %s1051_s3 = inlined_call_operand.vmem [shape: f32[8,1], index: 3, kind: output, shape index: {1}]   ;;  %s1052_s4 = inlined_call_operand.vmem [shape: f32[8,1], index: 4, kind: output, shape index: {2}]  }
   0x1   :  { %1056 = sst [smem:[#allocation12_spill]] %s1048_s0 }
   0x2   :  { %10 = vsyncpa [#allocation3], 0 }
   0x3   :  { %11 = vsyncpa [#allocation6], 0 }
   0x4   :  { %13 = vsyncpa [#allocation6 + $0x1], 0 }
   0x5   :  { %14 = vsyncpa [#allocation4], 0 }
   0x6   :  { %16 = vsyncpa [#allocation4 + $0x1], 0  ;;  %s860_s15 = smov 0   ;;  %s862_s16 = smov 0  }
   0x7   :  { %s864_s17 = smov 0   ;;  %s866_s18 = smov 0  }
   0x8   :  { %s868_s19 = smov 0   ;;  %s870_s20 = smov 0  }
   0x9 LB: > { %s573_s21 = sadd.s32 4294967295, %s826_s20   ;;  %s574_s22 = sadd.s32 4294967294, %s826_s20   ;;  %s826_s20 = sphi %s870_s20, %s22_s20   ;;  %s822_s19 = sphi %s868_s19, %s1076_s19   ;;  %s818_s18 = sphi %s866_s18, %s1075_s18   ;;  %s814_s17 = sphi %s864_s17, %s1074_s17   ;;  %s810_s16 = sphi %s862_s16, %s1073_s16   ;;  %s806_s15 = sphi %s860_s15, %s1072_s15  }
   0xa   : > { %s76_s23 = sadd.s32 1, %s814_s17  ;;  %p83_p0 = scmp.ne.s32.totalorder %s814_s17, %s810_s16 }
   0xb   : > { %p84_p1 = scmp.eq.s32.totalorder %s826_s20, 0  ;;  %p89_p2 = scmp.ne.s32.totalorder %s810_s16, %s806_s15 }
   0xc   : > { %p898_p3 = scmp.eq.s32.totalorder %s573_s21, 0  ;;  %p117_p4 = scmp.eq.s32.totalorder %s573_s21, 1 }
   0xd   : > { %p902_p5 = por %p84_p1, %p83_p0  ;;  %p123_p6 = scmp.eq.s32.totalorder %s574_s22, 1 }
   0xe   : > { %p908_p7 = por %p898_p3, %p89_p2  ;;  %p912_p8 = por %p117_p4, %p83_p0 }
   0xf   : > { %p916_p9 = por %p123_p6, %p89_p2  ;;  %p575_p10 = scmp.ge.s32.totalorder %s826_s20, 1 }
  0x10   : > { %s1059_s26 = scalar_select %p908_p7, 1, 0 }
  0x11   : > { %s1060_s27 = scalar_select %p912_p8, 1, 0 }
  0x12   : > { %s1061_s28 = scalar_select %p916_p9, 1, 0 }
  0x13   : > { %p182_p11 = scmp.lt.s32.totalorder %s826_s20, 3  ;;  %s828_s30 = smov [#allocation2]  }
  0x14   : > { %s197_s5 = sshll.u32 %s828_s30, 4  ;;  %p623_p1 = scmp.lt.s32.totalorder %s826_s20, 2  ;;  %s198_s5 = int_to_ptr.vmem [resolvable:$true] %s197_s5 }
  0x15   : > { %p923_p13 = pnand %p575_p10, %p182_p11  ;;  %s37_s8 = sadd.s32 1, %s822_s19 }
  0x16   : > { %p932_p4 = pnand %p623_p1, %p902_p5  ;;  %p39_p6 = scmp.ge.s32.totalorder %s37_s8, 2 }
  0x17   : > { %p610_p0 = pneg %p923_p13  ;;  %s208_s9 = sand.u32 1, %s814_s17  }
  0x18   : > { %s699_s10 = scalar_lea.vmem %s198_s5, 64  ;;  %p707_p8 = scmp.lt.s32.totalorder %s198_s5, %s198_s5 }
  0x19   : > { %p938_p2 = pnand %p610_p0, %p898_p3  ;;  %p700_p11 = scmp.ne.s32.totalorder %s198_s5, %s699_s10 }
  0x1a   : > { %p708_p5 = scmp.lt.s32.totalorder %s699_s10, %s699_s10 }
  0x1b   : > { %p690_p10 = pneg %p938_p2 }
  0x1c   : > { %p709_p1 = por %p708_p5, %p707_p8 }
  0x1d   : > { %p702_p12 = pnand %p700_p11, %p690_p10 }
  0x1f   : > { %p703_p9 = pneg %p702_p12 }
  0x21   : > { %p710_p7 = pnand %p709_p1, %p703_p9 }
  0x23   : > { %713 = shalt.err (!%p710_p7)
}
  0x24   : > { %s1065_s0 = sld [smem:[#allocation12_spill]]  ;;  %s1078_s8 = smov (%p39_p6, %s37_s8), 0 }
  0x25   : > { %1066 = sst [smem:[#allocation11_spill]] %s1078_s8  ;;  %s599_s13 = smul.u32 48, %s208_s9 }
  0x26   : > { %s71_s14 = ssub.s32 %s822_s19, %s1078_s8  ;;  %s600_s21 = smul.u32 768, %s822_s19 }
  0x27   : > { %p74_p8 = scmp.eq.s32.totalorder %s71_s14, 0  ;;  %s212_s7 = scalar_lea.vmem [#allocation5], %s599_s13 }
  0x28   : > { %s220_s30 = scalar_lea.hbm %s1049_s1, %s600_s21  ;;  %s221_s10 = sshll.u32 %s212_s7, 4  ;;  %s222_s10 = int_to_ptr.vmem [resolvable:$true] %s221_s10 }
  0x29   : > { %s962_s11 = scalar_select %p74_p8, %s814_s17, %s76_s23  }
  0x2a   : > { %613 = dma.hbm_to_vmem [thread:$0]  (!%p938_p2), %s1065_s0, 64, %s198_s5, [#allocation3]  }
  0x2b   : > { %s209_s12 = scalar_lea.sflag [#allocation6], %s208_s9  ;;  %p716_p7 = pneg %p932_p4 }
  0x2c   : > { %s727_s5 = scalar_lea.vmem %s222_s10, 768  ;;  %s829_s0 = smov [#allocation5]  }
  0x2d   : > { %p728_p9 = scmp.ne.s32.totalorder %s222_s10, %s727_s5  ;;  %s732_s8 = sshll.u32 %s829_s0, 4  ;;  %s733_s8 = int_to_ptr.vmem [resolvable:$false] %s732_s8 }
  0x2e   : > { %s734_s14 = scalar_lea.vmem %s733_s8, 1536  ;;  %p735_p2 = scmp.lt.s32.totalorder %s222_s10, %s733_s8 }
  0x2f   : > { %p730_p12 = pnand %p728_p9, %p716_p7  ;;  %p736_p6 = scmp.lt.s32.totalorder %s734_s14, %s727_s5 }
  0x31   : > { %p731_p0 = pneg %p730_p12  ;;  %p737_p10 = por %p736_p6, %p735_p2 }
  0x33   : > { %p738_p11 = pnand %p737_p10, %p731_p0 }
  0x35   : > { %741 = shalt.err (!%p738_p11)
}
  0x36   : > { %s830_s13 = smov 128   ;;  %s831_s23 = smov 8  }
  0x37   : > { %617 = dma.hbm_to_vmem [thread:$0]  (!%p932_p4), %s220_s30, 768, %s222_s10, %s209_s12, %s830_s13, %s830_s13, %s831_s23  }
  0x38   : > { %233 = sbr.rel (%p923_p13) target bundleno = 429 (0x1ad), region = 28 }
  0x3d   : > { %793 = dma.done.wait (%p898_p3), [#allocation3], 64  }
  0x3e   : > { %795 = vsyncadd (%p898_p3), [#allocation3], 4294967232  ;;  %s975_s0 = sand.u32 1, %s810_s16   ;;  %p1067_p5 = scmp.ne.s32.totalorder %s1059_s26, 0 }
  0x3f   : > { %s601_s8 = smul.u32 48, %s975_s0  ;;  %s240_s9 = scalar_lea.sflag [#allocation6], %s975_s0 }
  0x41   : > { %s243_s21 = scalar_lea.vmem [#allocation5], %s601_s8 }
  0x42   : > { %797 = dma.done.wait (%p1067_p5), %s240_s9, 768  }
  0x43   : > { %799 = vsyncadd (%p1067_p5), %s240_s9, 4294966528  ;;  %s581_s29 = sshll.u32 %s975_s0, 4  ;;  %p287_p13 = scmp.eq.s32.totalorder %s818_s18, 0 }
  0x44   : > { %s985_s24 = scalar_lea.vmem [#allocation7], %s581_s29  ;;  %vm293_vm0 = vcmask (%p287_p13), 7168   ;;  %v832_v0 = vmov (%p287_p13), 0.0  }
  0x45   : > { %292 = sbr.rel (!%p287_p13) target bundleno = 74 (0x4a), region = 40  ;;  %294 = vst.msk [vmem:[%s1051_s3] sm:$0xff] (%p287_p13), %vm293_vm0, %v832_v0  ;;  %295 = vst.msk [vmem:[%s1052_s4] sm:$0xff] (%p287_p13), %vm293_vm0, %v832_v0 }
  0x4a PF: > { %v679_v1 = vld [vmem:[%s243_s21 + $0x24] ss:$8 sps:$4 sm:$0xff]   ;;  %v681_v2 = vld [vmem:[%s243_s21 + $0x20] ss:$8 sps:$4 sm:$0xff]   ;;  %v833_v3 = vmov 0   ;;  %vm333_vm1 = vcmask 392192  }
  0x4b   : > { %369 = vmatprep.mubr.bf16.mxu0 %v833_v3  ;;  %347 = vmatprep.subr.bf16.mxu0 %v679_v1  ;;  %v682_v4 = vld [vmem:[%s243_s21 + $0x14] ss:$8 sps:$4 sm:$0xff]   ;;  %v684_v5 = vld [vmem:[%s243_s21 + $0x10] ss:$8 sps:$4 sm:$0xff]   ;;  %v685_v6 = vld [vmem:[%s243_s21 + $0x4] ss:$8 sps:$4 sm:$0xff]  }
  0x4c   : > { %348 = vmatpush1.bf16.msra.mxu0 %v681_v2  ;;  %v687_v7 = vld [vmem:[%s243_s21] ss:$8 sps:$4 sm:$0xff]   ;;  %v296_v8 = vld [vmem:[#allocation2] sm:$0xf]  ;;  %s598_s26 = sshll.u32 %s818_s18, 8  ;;  %s422_s7 = sshll.u32 %s985_s24, 4  ;;  %s423_s7 = int_to_ptr.vmem [resolvable:$true] %s422_s7 }
  0x4d   : > { %349 = vmatprep.subr.bf16.mxu0 %v682_v4  ;;  %s420_s5 = scalar_lea.hbm %s1050_s2, %s598_s26  ;;  %s396_s14 = scalar_lea.sflag [#allocation4], %s975_s0 }
  0x4e   : > { %s742_s13 = scalar_lea.vmem %s423_s7, 256  ;;  %p1068_p4 = scmp.ne.s32.totalorder %s1060_s27, 0 }
  0x4f   : > { %p743_p3 = scmp.ne.s32.totalorder %s423_s7, %s742_s13  ;;  %s834_s23 = smov [#allocation7]  }
  0x50   : > { %350 = vmatpush1.bf16.msra.mxu0 %v684_v5  ;;  %s746_s8 = sshll.u32 %s834_s23, 4  ;;  %s747_s8 = int_to_ptr.vmem [resolvable:$false] %s746_s8 }
  0x51   : > { %351 = vmatprep.subr.bf16.mxu0 %v685_v6  ;;  %p744_p1 = pnand %p743_p3, %p1068_p4  ;;  %s748_s9 = scalar_lea.vmem %s747_s8, 512 }
  0x52   : > { %p749_p7 = scmp.lt.s32.totalorder %s423_s7, %s747_s8  ;;  %p750_p9 = scmp.lt.s32.totalorder %s748_s9, %s742_s13 }
  0x53   : > { %p745_p8 = pneg %p744_p1 }
  0x54   : > { %352 = vmatpush1.bf16.msra.mxu0 %v687_v7  ;;  %p751_p12 = por %p750_p9, %p749_p7 }
  0x56   : > { %p752_p0 = pnand %p751_p12, %p745_p8 }
  0x57   : > { %589 = vmatmul.mubr.msk.bf16.vlgmr.msra.gmra.mxu0 %vm333_vm1, %v296_v8 }
 0x117   : > { %v371_v9 = vpop.f32.mrf.mxu0 }
 0x118   : > { %378 = vst [vmem:[%s985_s24] sm:$0xff] %v371_v9  ;;  %v388_v14 = vmul.f32 %v371_v9, %v371_v9 }
 0x119   : > { %v373_v10 = vpop.f32.mrf.mxu0 }
 0x11a   : > { %379 = vst [vmem:[%s985_s24 + $0x8] sm:$0xff] %v373_v10  ;;  %v381_v11 = vadd.f32 %v373_v10, %v371_v9  ;;  %v389_v12 = vmul.f32 %v373_v10, %v373_v10 }
 0x11b   : > { %v375_v13 = vpop.f32.mrf.mxu0 }
 0x11c   : > { %382 = vadd.xlane.f32.xlu0 %v381_v11  ;;  %v390_v16 = vadd.f32 %v389_v12, %v388_v14 }
 0x11d   : > { %v376_v15 = vpop.f32.mrf.mxu0 }
 0x120   : > { %391 = vadd.xlane.f32.xlu0 %v390_v16 }
 0x121   : > { %755 = shalt.err (!%p752_p0)
}
 0x122   : > { %s756_s18 = scalar_lea.hbm %s420_s5, 256  ;;  %s760_s29 = scalar_lea.hbm %s1050_s2, 512 }
 0x123   : > { %p757_p2 = scmp.ne.s32.totalorder %s420_s5, %s756_s18  ;;  %p761_p11 = scmp.lt.s32.totalorder %s420_s5, %s1050_s2 }
 0x124   : > { %p762_p5 = scmp.lt.s32.totalorder %s760_s29, %s756_s18 }
 0x125   : > { %p758_p6 = pnand %p757_p2, %p1068_p4 }
 0x126   : > { %p763_p13 = por %p762_p5, %p761_p11 }
 0x127   : > { %p759_p10 = pneg %p758_p6 }
 0x129   : > { %p764_p3 = pnand %p763_p13, %p759_p10 }
 0x12b   : > { %767 = shalt.err (!%p764_p3)
}
 0x12c   : > { %608 = dma.vmem_to_hbm [thread:$0]  (%p1068_p4), %s423_s7, 256, %s420_s5, %s396_s14   ;;  %v380_v17 = vld [vmem:[%s1051_s3] sm:$0xff]  ;;  %vm385_vm2 = vcmask 7168  }
 0x12d   : > { %v387_v20 = vld [vmem:[%s1052_s4] sm:$0xff] }
 0x1a5   : > { %v383_v18 = vpop.xlane.xlu0 %382 }
 0x1a6   : > { %v384_v19 = vadd.f32 %v383_v18, %v380_v17 }
 0x1a8   : > { %386 = vst.msk [vmem:[%s1051_s3] sm:$0xff] %vm385_vm2, %v384_v19 }
 0x1a9   : > { %v392_v21 = vpop.xlane.xlu0 %391 }
 0x1aa   : > { %v393_v22 = vadd.f32 %v392_v21, %v387_v20 }
 0x1ac   : > { %394 = vst.msk [vmem:[%s1052_s4] sm:$0xff] %vm385_vm2, %v393_v22 }
 0x1ad PF: > { %s454_s7 = sand.u32 1, %s806_s15   ;;  %p1069_p4 = scmp.ne.s32.totalorder %s1061_s28, 0 }
 0x1ae   : > { %p1070_p1 = scmp.ge.s32.totalorder %s826_s20, 2  ;;  %s455_s5 = scalar_lea.sflag [#allocation4], %s454_s7 }
 0x1b0   : > { %p619_p8 = pnand %p1070_p1, %p1069_p4 }
 0x1b2   : > { %p620_p7 = pneg %p619_p8 }
 0x1b4   : > { %801 = dma.done.wait (%p620_p7), %s455_s5, 256  }
 0x1b5   : > { %803 = vsyncadd (%p620_p7), %s455_s5, 4294967040  ;;  %s22_s20 = sadd.s32 1, %s826_s20   ;;  %s1071_s14 = sld [smem:[#allocation11_spill]] }
 0x1b6   : > { %p19_p9 = scmp.ge.s32.totalorder %s22_s20, 4   ;;  %s1072_s15 = smov %s810_s16 }
 0x1b7   : > { %s1073_s16 = smov %s814_s17  ;;  %s1074_s17 = smov %s962_s11 }
 0x1b8   : > { %s1075_s18 = smov %s822_s19  ;;  %21 = sbr.rel (!%p19_p9) target bundleno = 9 (0x9), region = 107 }
 0x1bb   : > { %s1076_s19 = smov %s1071_s14 }
 0x1bd   :  { %460 = vsyncpa [#allocation3], 1 }
 0x1be   :  { %462 = vsyncpa [#allocation3 + $0x1], 1 }
 0x1bf   :  { %463 = vsyncpa [#allocation6], 1 }
 0x1c0   :  { %465 = vsyncpa [#allocation6 + $0x1], 1 }
 0x1c1   :  { %466 = vsyncpa [#allocation4], 1 }
 0x1c2   :  { %468 = vsyncpa [#allocation4 + $0x1], 1 }

</bundles_post_ra>
